<compile_context>
chip_gen: v6e
topology: v6e:2x2x1
jax: 0.10.0
libtpu: 0.0.40
codegen_flags: <defaults>
</compile_context>

<pallas_src>
import functools

import jax
import jax.numpy as jnp
from jax.experimental import pallas as pl
from jax.experimental.pallas import tpu as pltpu


def _round_up(x, m):
    return ((x + m - 1) // m) * m


def _policy_kernel(buy_dim,
                   state_ref, w1_ref, w2_ref, b12_ref, wh_ref, bh_ref,
                   out_ref):
    # trunk: Linear -> Hardtanh -> Linear -> Hardtanh  (Hardtanh default [-1, 1])
    x = state_ref[...].astype(jnp.bfloat16)
    h = jnp.dot(x, w1_ref[...], preferred_element_type=jnp.float32) + b12_ref[0:1, :]
    h = jnp.clip(h, -1.0, 1.0).astype(jnp.bfloat16)
    h = jnp.dot(h, w2_ref[...], preferred_element_type=jnp.float32) + b12_ref[1:2, :]
    h = jnp.clip(h, -1.0, 1.0).astype(jnp.bfloat16)

    # fused heads: one matmul for [buy | sale | use | prices | zero-pad]
    logits = jnp.dot(h, wh_ref[...], preferred_element_type=jnp.float32) + bh_ref[...]

    # lane mask selecting the buy (softmax) columns
    col = jax.lax.broadcasted_iota(jnp.int32, logits.shape, 1)
    is_buy = col < buy_dim

    # numerically-stable masked softmax over the buy columns (exact divide)
    masked = jnp.where(is_buy, logits, -jnp.inf)
    m = jnp.max(masked, axis=-1, keepdims=True)
    e = jnp.exp(masked - m)                       # exp(-inf) == 0 on non-buy cols
    denom = jnp.sum(e, axis=-1, keepdims=True)
    softmax_val = e / denom

    # sigmoid on the full width; padded columns give 0.5 and are sliced off later
    sigmoid_val = jax.nn.sigmoid(logits)

    # single unmasked, lane-dense store
    out_ref[...] = jnp.where(is_buy, softmax_val, sigmoid_val)


def pack_params(params, weight_dtype=jnp.bfloat16):
    """Pack per-head params into fused, 128-lane-padded slabs.  Call ONCE."""
    w1 = params["w1"]
    w2 = params["w2"]
    state_dim, hidden = w1.shape
    H = _round_up(hidden, 128)

    head_dims = (params["wb"].shape[1], params["ws"].shape[1],
                 params["wu"].shape[1], params["wp"].shape[1])
    total = sum(head_dims)
    T = _round_up(total, 128)

    # trunk, padded to lane-dense hidden width (exact: zeros propagate)
    w1p = jnp.zeros((state_dim, H), jnp.float32).at[:, :hidden].set(w1)
    w2p = jnp.zeros((H, H), jnp.float32).at[:hidden, :hidden].set(w2)
    b12 = jnp.zeros((2, H), jnp.float32)
    b12 = b12.at[0, :hidden].set(params["b1"][0])
    b12 = b12.at[1, :hidden].set(params["b2"][0])

    # fused heads, padded to lane-dense total width
    wh = jnp.concatenate(
        [params["wb"], params["ws"], params["wu"], params["wp"]], axis=1)
    bh = jnp.concatenate(
        [params["bb"], params["bs"], params["bu"], params["bp"]], axis=1)
    whp = jnp.zeros((H, T), jnp.float32).at[:hidden, :total].set(wh)
    bhp = jnp.zeros((1, T), jnp.float32).at[:, :total].set(bh)

    packed = {
        "w1": w1p.astype(weight_dtype),
        "w2": w2p.astype(weight_dtype),
        "wh": whp.astype(weight_dtype),
        "b12": b12,   # f32
        "bh": bhp,    # f32
    }
    return packed, head_dims


def _choose_tb(B):
    """Batch tile: >=2 grid steps once B is large enough (v7x: 2 TensorCores),
    rows a multiple of 8 sublanes, capped at 2048 rows per tile."""
    if B < 16:
        return B                      # single tiny step; block == full array dim
    half = -(-B // 2)                 # cdiv(B, 2)
    return min(2048, _round_up(half, 8))


def deterministic_policy_forward(state, packed, head_dims):
    """state: [B, state_dim] f32.  packed: output of pack_params.

    Returns (actions, log_probs), each a 4-tuple:
      buy    [B, n_firms*n_branches + 1]
      sale   [B, n_branches]
      use    [B, n_branches (+ n_branches*limit)]
      prices [B, n_branches]
    """
    B, state_dim = state.shape
    w1, w2, b12 = packed["w1"], packed["w2"], packed["b12"]
    wh, bh = packed["wh"], packed["bh"]
    H = w1.shape[1]
    T = wh.shape[1]
    buy_dim, sale_dim, use_dim, price_dim = head_dims
    total = buy_dim + sale_dim + use_dim + price_dim

    TB = _choose_tb(B)
    grid = (pl.cdiv(B, TB),)

    def const_map(i):
        return (0, 0)

    flops = 2 * B * (state_dim * H + H * H + H * T)
    bytes_accessed = int(
        state.size * state.dtype.itemsize
        + sum(a.size * a.dtype.itemsize for a in (w1, w2, b12, wh, bh))
        + B * T * 4)

    out = pl.pallas_call(
        functools.partial(_policy_kernel, buy_dim),
        out_shape=jax.ShapeDtypeStruct((B, T), jnp.float32),
        grid=grid,
        in_specs=[
            pl.BlockSpec((TB, state_dim), lambda i: (i, 0)),
            pl.BlockSpec(w1.shape, const_map),
            pl.BlockSpec(w2.shape, const_map),
            pl.BlockSpec(b12.shape, const_map),
            pl.BlockSpec(wh.shape, const_map),
            pl.BlockSpec(bh.shape, const_map),
        ],
        out_specs=pl.BlockSpec((TB, T), lambda i: (i, 0)),
        compiler_params=pltpu.CompilerParams(
            dimension_semantics=("parallel",)),
        cost_estimate=pl.CostEstimate(
            flops=flops, transcendentals=2 * B * T,
            bytes_accessed=bytes_accessed),
    )(state, w1, w2, b12, wh, bh)

    buy = out[:, :buy_dim]
    sale = out[:, buy_dim:buy_dim + sale_dim]
    use = out[:, buy_dim + sale_dim:buy_dim + sale_dim + use_dim]
    prices = out[:, buy_dim + sale_dim + use_dim:total]

    actions = (buy, sale, use, prices)
    # log_probs are exact zeros per the reference module (wrapper glue only).
    log_probs = tuple(jnp.zeros(a.shape, a.dtype) for a in actions)
    return actions, log_probs


def init_params(key, state_dim, hidden_dim, n_branches, n_firms, limit=False):
    """Mimics nn.Linear's U(-1/sqrt(fan_in), 1/sqrt(fan_in)) init."""
    limit_i = int(limit)
    dims = {
        "1": (state_dim, hidden_dim),
        "2": (hidden_dim, hidden_dim),
        "b": (hidden_dim, n_firms * n_branches + 1),
        "s": (hidden_dim, n_branches),
        "u": (hidden_dim, n_branches + n_branches * limit_i),
        "p": (hidden_dim, n_branches),
    }
    params = {}
    for name, (fan_in, fan_out) in dims.items():
        key, kw, kb = jax.random.split(key, 3)
        bound = 1.0 / jnp.sqrt(jnp.float32(fan_in))
        params[f"w{name}"] = jax.random.uniform(
            kw, (fan_in, fan_out), jnp.float32, -bound, bound)
        params[f"b{name}"] = jax.random.uniform(
            kb, (1, fan_out), jnp.float32, -bound, bound)
    return params


def _reference_forward(state, params):
    """Pure-JAX (f32) reference matching the PyTorch module."""
    h = jnp.clip(state @ params["w1"] + params["b1"], -1.0, 1.0)
    h = jnp.clip(h @ params["w2"] + params["b2"], -1.0, 1.0)
    buy = jax.nn.softmax(h @ params["wb"] + params["bb"], axis=-1)
    sale = jax.nn.sigmoid(h @ params["ws"] + params["bs"])
    use = jax.nn.sigmoid(h @ params["wu"] + params["bu"])
    prices = jax.nn.sigmoid(h @ params["wp"] + params["bp"])
    return buy, sale, use, prices


if __name__ == "__main__":
    # small, module-consistent shapes
    batch = 2
    state_dim = 16
    hidden_dim = 32
    n_branches = 4
    n_firms = 3
    limit = False

    key = jax.random.PRNGKey(0)
    key, kp, kx = jax.random.split(key, 3)
    params = init_params(kp, state_dim, hidden_dim, n_branches, n_firms, limit)
    state = jax.random.normal(kx, (batch, state_dim), jnp.float32)

    packed, head_dims = pack_params(params)
    actions, log_probs = deterministic_policy_forward(state, packed, head_dims)
    jax.block_until_ready(actions)
    jax.block_until_ready(log_probs)

    buy, sale, use, prices = actions
    assert buy.shape == (batch, n_firms * n_branches + 1)
    assert sale.shape == (batch, n_branches)
    assert use.shape == (batch, n_branches)
    assert prices.shape == (batch, n_branches)

    # softmax rows sum to 1 (exact divide in the kernel)
    assert jnp.allclose(jnp.sum(buy, axis=-1), 1.0, atol=1e-5)
    # log_probs are zeros
    assert all(bool(jnp.all(lp == 0)) for lp in log_probs)

    # compare against pure-JAX f32 reference (bf16 weights -> loosened tol)
    ref_buy, ref_sale, ref_use, ref_prices = _reference_forward(state, params)
    assert jnp.allclose(buy, ref_buy, atol=2e-2)
    assert jnp.allclose(sale, ref_sale, atol=2e-2)
    assert jnp.allclose(use, ref_use, atol=2e-2)
    assert jnp.allclose(prices, ref_prices, atol=2e-2)

    print("KERNEL_OK")
</pallas_src>

<mosaic_0001>
module attributes {stable_mosaic.version = 11 : i64} {
  func.func @_policy_kernel(%arg0: i32, %arg1: memref<2x16xf32, #tpu.memory_space<vmem>>, %arg2: memref<16x128xbf16, #tpu.memory_space<vmem>>, %arg3: memref<128x128xbf16, #tpu.memory_space<vmem>>, %arg4: memref<2x128xf32, #tpu.memory_space<vmem>>, %arg5: memref<128x128xbf16, #tpu.memory_space<vmem>>, %arg6: memref<1x128xf32, #tpu.memory_space<vmem>>, %arg7: memref<2x128xf32, #tpu.memory_space<vmem>>) attributes {dimension_semantics = [#tpu.dimension_semantics<parallel>], iteration_bounds = array<i64: 1>, scalar_prefetch = 0 : i64, scratch_operands = 0 : i64, tpu.core_type = #tpu.core_type<tc>, window_params = [{transform_indices = @transform_0, window_bounds = array<i64: 2, 16>}, {pipeline_mode = #tpu.pipeline_mode<synchronous>, transform_indices = @transform_1, window_bounds = array<i64: 16, 128>}, {pipeline_mode = #tpu.pipeline_mode<synchronous>, transform_indices = @transform_2, window_bounds = array<i64: 128, 128>}, {pipeline_mode = #tpu.pipeline_mode<synchronous>, transform_indices = @transform_3, window_bounds = array<i64: 2, 128>}, {pipeline_mode = #tpu.pipeline_mode<synchronous>, transform_indices = @transform_4, window_bounds = array<i64: 128, 128>}, {pipeline_mode = #tpu.pipeline_mode<synchronous>, transform_indices = @transform_5, window_bounds = array<i64: 1, 128>}, {transform_indices = @transform_6, window_bounds = array<i64: 2, 128>}]} {
    %c0 = arith.constant 0 : index
    %c0_0 = arith.constant 0 : index
    %0 = vector.load %arg1[%c0, %c0_0] : memref<2x16xf32, #tpu.memory_space<vmem>>, vector<2x16xf32>
    %1 = arith.truncf %0 : vector<2x16xf32> to vector<2x16xbf16>
    %c0_1 = arith.constant 0 : index
    %c0_2 = arith.constant 0 : index
    %2 = vector.load %arg2[%c0_1, %c0_2] : memref<16x128xbf16, #tpu.memory_space<vmem>>, vector<16x128xbf16>
    %cst = arith.constant dense<0.000000e+00> : vector<2x128xf32>
    %3 = tpu.matmul %1, %2, %cst {dimension_numbers = #tpu.dot_dimension_numbers<[1], [0], [0], [1], [0, 0, 1, 1], [], []>} : vector<2x16xbf16>, vector<16x128xbf16>, vector<2x128xf32> -> vector<2x128xf32>
    %c0_3 = arith.constant 0 : index
    %c0_4 = arith.constant 0 : index
    %4 = vector.load %arg4[%c0_3, %c0_4] : memref<2x128xf32, #tpu.memory_space<vmem>>, vector<1x128xf32>
    %5 = vector.broadcast %4 : vector<1x128xf32> to vector<2x128xf32>
    %6 = arith.addf %3, %5 : vector<2x128xf32>
    %cst_5 = arith.constant -1.000000e+00 : f32
    %cst_6 = arith.constant 1.000000e+00 : f32
    %7 = vector.broadcast %cst_5 : f32 to vector<2x128xf32>
    %8 = arith.maximumf %7, %6 : vector<2x128xf32>
    %9 = vector.broadcast %cst_6 : f32 to vector<2x128xf32>
    %10 = arith.minimumf %9, %8 : vector<2x128xf32>
    %11 = arith.truncf %10 : vector<2x128xf32> to vector<2x128xbf16>
    %c0_7 = arith.constant 0 : index
    %c0_8 = arith.constant 0 : index
    %12 = vector.load %arg3[%c0_7, %c0_8] : memref<128x128xbf16, #tpu.memory_space<vmem>>, vector<128x128xbf16>
    %cst_9 = arith.constant dense<0.000000e+00> : vector<2x128xf32>
    %13 = tpu.matmul %11, %12, %cst_9 {dimension_numbers = #tpu.dot_dimension_numbers<[1], [0], [0], [1], [0, 0, 1, 1], [], []>} : vector<2x128xbf16>, vector<128x128xbf16>, vector<2x128xf32> -> vector<2x128xf32>
    %c1 = arith.constant 1 : index
    %c0_10 = arith.constant 0 : index
    %14 = vector.load %arg4[%c1, %c0_10] : memref<2x128xf32, #tpu.memory_space<vmem>>, vector<1x128xf32>
    %15 = vector.broadcast %14 : vector<1x128xf32> to vector<2x128xf32>
    %16 = arith.addf %13, %15 : vector<2x128xf32>
    %cst_11 = arith.constant -1.000000e+00 : f32
    %cst_12 = arith.constant 1.000000e+00 : f32
    %17 = vector.broadcast %cst_11 : f32 to vector<2x128xf32>
    %18 = arith.maximumf %17, %16 : vector<2x128xf32>
    %19 = vector.broadcast %cst_12 : f32 to vector<2x128xf32>
    %20 = arith.minimumf %19, %18 : vector<2x128xf32>
    %21 = arith.truncf %20 : vector<2x128xf32> to vector<2x128xbf16>
    %c0_13 = arith.constant 0 : index
    %c0_14 = arith.constant 0 : index
    %22 = vector.load %arg5[%c0_13, %c0_14] : memref<128x128xbf16, #tpu.memory_space<vmem>>, vector<128x128xbf16>
    %cst_15 = arith.constant dense<0.000000e+00> : vector<2x128xf32>
    %23 = tpu.matmul %21, %22, %cst_15 {dimension_numbers = #tpu.dot_dimension_numbers<[1], [0], [0], [1], [0, 0, 1, 1], [], []>} : vector<2x128xbf16>, vector<128x128xbf16>, vector<2x128xf32> -> vector<2x128xf32>
    %c0_16 = arith.constant 0 : index
    %c0_17 = arith.constant 0 : index
    %24 = vector.load %arg6[%c0_16, %c0_17] : memref<1x128xf32, #tpu.memory_space<vmem>>, vector<1x128xf32>
    %25 = vector.broadcast %24 : vector<1x128xf32> to vector<2x128xf32>
    %26 = arith.addf %23, %25 : vector<2x128xf32>
    %27 = tpu.iota {dimensions = array<i32: 1>} : vector<2x128xi32>
    %c13_i32 = arith.constant 13 : i32
    %28 = vector.broadcast %c13_i32 : i32 to vector<2x128xi32>
    %29 = arith.cmpi slt, %27, %28 : vector<2x128xi32>
    %cst_18 = arith.constant 0xFF800000 : f32
    %30 = vector.broadcast %cst_18 : f32 to vector<2x128xf32>
    %31 = arith.select %29, %26, %30 : vector<2x128xi1>, vector<2x128xf32>
    %cst_19 = arith.constant dense<0xFF800000> : vector<2xf32>
    %32 = vector.multi_reduction <maximumf>, %31, %cst_19 [1] : vector<2x128xf32> to vector<2xf32>
    %33 = vector.shape_cast %32 : vector<2xf32> to vector<2x1xf32>
    %34 = vector.broadcast %33 : vector<2x1xf32> to vector<2x128xf32>
    %35 = arith.subf %31, %34 : vector<2x128xf32>
    %36 = math.exp %35 : vector<2x128xf32>
    %cst_20 = arith.constant dense<0.000000e+00> : vector<2xf32>
    %37 = vector.multi_reduction <add>, %36, %cst_20 [1] : vector<2x128xf32> to vector<2xf32>
    %38 = vector.shape_cast %37 : vector<2xf32> to vector<2x1xf32>
    %39 = vector.broadcast %38 : vector<2x1xf32> to vector<2x128xf32>
    %40 = arith.divf %36, %39 : vector<2x128xf32>
    %41 = arith.negf %26 : vector<2x128xf32>
    %42 = math.exp %41 : vector<2x128xf32>
    %cst_21 = arith.constant 1.000000e+00 : f32
    %43 = vector.broadcast %cst_21 : f32 to vector<2x128xf32>
    %44 = arith.addf %43, %42 : vector<2x128xf32>
    %45 = arith.divf %43, %44 : vector<2x128xf32>
    %46 = arith.select %29, %40, %45 : vector<2x128xi1>, vector<2x128xf32>
    %c0_22 = arith.constant 0 : index
    %c0_23 = arith.constant 0 : index
    %47 = vector.load %arg7[%c0_22, %c0_23] : memref<2x128xf32, #tpu.memory_space<vmem>>, vector<2x128xf32>
    tpu.vector_store %arg7[%c0_22, %c0_23], %46 {strides = array<i32>} : memref<2x128xf32, #tpu.memory_space<vmem>>, vector<2x128xf32>,
    return
  }
  func.func @transform_0(%arg0: i32) -> (i32, i32) {
    %c0_i32 = arith.constant 0 : i32
    %c0_i32_0 = arith.constant 0 : i32
    return %arg0, %c0_i32 : i32, i32
  }
  func.func @transform_1(%arg0: i32) -> (i32, i32) {
    %c0_i32 = arith.constant 0 : i32
    %c0_i32_0 = arith.constant 0 : i32
    %c0_i32_1 = arith.constant 0 : i32
    return %c0_i32, %c0_i32_0 : i32, i32
  }
  func.func @transform_2(%arg0: i32) -> (i32, i32) {
    %c0_i32 = arith.constant 0 : i32
    %c0_i32_0 = arith.constant 0 : i32
    %c0_i32_1 = arith.constant 0 : i32
    return %c0_i32, %c0_i32_0 : i32, i32
  }
  func.func @transform_3(%arg0: i32) -> (i32, i32) {
    %c0_i32 = arith.constant 0 : i32
    %c0_i32_0 = arith.constant 0 : i32
    %c0_i32_1 = arith.constant 0 : i32
    return %c0_i32, %c0_i32_0 : i32, i32
  }
  func.func @transform_4(%arg0: i32) -> (i32, i32) {
    %c0_i32 = arith.constant 0 : i32
    %c0_i32_0 = arith.constant 0 : i32
    %c0_i32_1 = arith.constant 0 : i32
    return %c0_i32, %c0_i32_0 : i32, i32
  }
  func.func @transform_5(%arg0: i32) -> (i32, i32) {
    %c0_i32 = arith.constant 0 : i32
    %c0_i32_0 = arith.constant 0 : i32
    %c0_i32_1 = arith.constant 0 : i32
    return %c0_i32, %c0_i32_0 : i32, i32
  }
  func.func @transform_6(%arg0: i32) -> (i32, i32) {
    %c0_i32 = arith.constant 0 : i32
    %c0_i32_0 = arith.constant 0 : i32
    return %arg0, %c0_i32 : i32, i32
  }
}

</mosaic_0001>

<bundles_post_ra>
// kernel: tpu_custom_call.1
= control target key start
LH: loop header
LB: loop body
LE: loop exit
PB: predicated region body
PF: predicated region fallthrough
CT: control target
= control target key end

     0   :  { %11 = vsyncpa [#allocation3], 0  ;;  %s735_s0 = inlined_call_operand.hbm [shape: f32[2,16], index: 0, kind: input, shape index: {}]   ;;  %s736_s1 = inlined_call_operand.hbm [shape: bf16[16,128], index: 1, kind: input, shape index: {}]   ;;  %s737_s2 = inlined_call_operand.hbm [shape: bf16[128,128], index: 2, kind: input, shape index: {}]   ;;  %s738_s3 = inlined_call_operand.vmem [shape: f32[2,128], index: 3, kind: input, shape index: {}]   ;;  %s739_s4 = inlined_call_operand.hbm [shape: bf16[128,128], index: 4, kind: input, shape index: {}]   ;;  %s740_s5 = inlined_call_operand.vmem [shape: f32[1,128], index: 5, kind: input, shape index: {}]   ;;  %s741_s6 = inlined_call_operand.hbm [shape: f32[2,128], index: 6, kind: output, shape index: {}]  }
   0x1   :  { %12 = vsyncpa [#allocation6], 0 }
   0x2   :  { %13 = vsyncpa [#allocation9], 0 }
   0x3   :  { %14 = vsyncpa [#allocation4], 0  ;;  %s636_s21 = smov [#allocation5]  }
   0x4   :  { %s30_s22 = sshll.u32 %s636_s21, 4  ;;  %s31_s22 = int_to_ptr.vmem [resolvable:$true] %s30_s22 }
   0x5   :  { %s536_s23 = scalar_lea.vmem %s31_s22, 128  ;;  %p541_p1 = scmp.lt.s32.totalorder %s31_s22, %s31_s22 }
   0x6   :  { %p537_p0 = scmp.ne.s32.totalorder %s31_s22, %s536_s23  ;;  %p542_p2 = scmp.lt.s32.totalorder %s536_s23, %s536_s23 }
   0x8   :  { %p543_p3 = por %p542_p2, %p541_p1 }
   0xa   :  { %p544_p4 = pnand %p543_p3, %p537_p0 }
   0xc   :  { %547 = shalt.err (!%p544_p4)
}
   0xd   :  { %s637_s24 = smov 64   ;;  %s638_s25 = smov 4  }
   0xe   :  { %36 = dma.hbm_to_vmem [thread:$0]  %s736_s1, 128, %s31_s22, [#allocation6], %s637_s24, %s637_s24, %s638_s25  }
   0xf   :  { %s639_s28 = smov [#allocation2]   ;;  %s640_s30 = smov [#allocation7]  }
  0x10   :  { %s21_s29 = sshll.u32 %s639_s28, 4  ;;  %s42_s7 = sshll.u32 %s640_s30, 4  ;;  %s22_s29 = int_to_ptr.vmem [resolvable:$true] %s21_s29  ;;  %s43_s7 = int_to_ptr.vmem [resolvable:$true] %s42_s7 }
  0x11   :  { %s556_s8 = scalar_lea.vmem %s22_s29, 32  ;;  %p561_p6 = scmp.lt.s32.totalorder %s22_s29, %s22_s29 }
  0x12   :  { %p557_p5 = scmp.ne.s32.totalorder %s22_s29, %s556_s8  ;;  %p562_p7 = scmp.lt.s32.totalorder %s556_s8, %s556_s8 }
  0x14   :  { %p563_p8 = por %p562_p7, %p561_p6 }
  0x16   :  { %p564_p9 = pnand %p563_p8, %p557_p5 }
  0x18   :  { %567 = shalt.err (!%p564_p9)
}
  0x19   :  { %24 = dma.hbm_to_vmem [thread:$0]  %s735_s0, 32, %s22_s29, [#allocation3]  }
  0x1a   :  { %s576_s11 = scalar_lea.vmem %s43_s7, 1024  ;;  %p581_p11 = scmp.lt.s32.totalorder %s43_s7, %s43_s7 }
  0x1b   :  { %p577_p10 = scmp.ne.s32.totalorder %s43_s7, %s576_s11  ;;  %p582_p12 = scmp.lt.s32.totalorder %s576_s11, %s576_s11 }
  0x1d   :  { %p583_p13 = por %p582_p12, %p581_p11 }
  0x1f   :  { %p584_p0 = pnand %p583_p13, %p577_p10 }
  0x21   :  { %587 = shalt.err (!%p584_p0)
}
  0x22   :  { %48 = dma.hbm_to_vmem [thread:$0]  %s737_s2, 1024, %s43_s7, [#allocation6], %s637_s24, %s637_s24, %s638_s25  }
  0x23   :  { %s641_s13 = smov [#allocation8]  }
  0x24   :  { %s56_s14 = sshll.u32 %s641_s13, 4  ;;  %s57_s14 = int_to_ptr.vmem [resolvable:$true] %s56_s14 }
  0x25   :  { %s596_s15 = scalar_lea.vmem %s57_s14, 1024  ;;  %p601_p2 = scmp.lt.s32.totalorder %s57_s14, %s57_s14 }
  0x26   :  { %p597_p1 = scmp.ne.s32.totalorder %s57_s14, %s596_s15  ;;  %p602_p3 = scmp.lt.s32.totalorder %s596_s15, %s596_s15 }
  0x28   :  { %p603_p4 = por %p602_p3, %p601_p2 }
  0x2a   :  { %p604_p5 = pnand %p603_p4, %p597_p1 }
  0x2c   :  { %607 = shalt.err (!%p604_p5)
}
  0x2d   :  { %62 = dma.hbm_to_vmem [thread:$0]  %s739_s4, 1024, %s57_s14, [#allocation9], %s637_s24, %s637_s24, %s638_s25  }
  0x2e   :  { %628 = dma.done.wait [#allocation3], 32  }
  0x2f   :  { %629 = vsyncadd [#allocation3], 4294967264 }
  0x30   :  { %630 = dma.done.wait [#allocation6], 1152  }
  0x31   :  { %631 = vsyncadd [#allocation6], 4294966144 }
  0x32   :  { %632 = dma.done.wait [#allocation9], 1024  }
  0x33   :  { %633 = vsyncadd [#allocation9], 4294966272  ;;  %v642_v0 = vmov 0.0   ;;  %vm643_vm0 = vmmov 0   ;;  %v503_v1 = vld [vmem:[#allocation5] sm:$0xff]   ;;  %vm93_vm1 = vcmask 130048   ;;  %v363_v36 = vlaneseq }
  0x34   :  { %448 = vmatprep.subr.bf16.mxu0 %v642_v0  ;;  %450 = vmatprep.mubr.msk.bf16.mxu0 %vm643_vm0, %v642_v0  ;;  %v78_v2 = vld [vmem:[#allocation2] sm:$0x3]  ;;  %v504_v4 = vld [vmem:[#allocation7 + $0x38] sm:$0xff]   ;;  %v506_v6 = vld [vmem:[#allocation7 + $0x28] sm:$0xff]   ;;  %vm367_vm3 = vcmask 1041408  }
  0x35   :  { %454 = vmatprep.subr.bf16.mxu1 %v642_v0  ;;  %470 = vmatprep.mubr.msk.bf16.mxu1 %vm643_vm0, %v642_v0  ;;  %v79_v3 = vpack.c.bf16 %v78_v2, %v78_v2  ;;  %v505_v5 = vld [vmem:[#allocation7 + $0x30] sm:$0xff]   ;;  %v507_v7 = vld [vmem:[#allocation7 + $0x20] sm:$0xff]   ;;  %v508_v8 = vld [vmem:[#allocation7 + $0x18] sm:$0xff]   ;;  %v364_v37 = vand.u32 127, %v363_v36 }
  0x36   :  { %449 = vmatpush3.bf16.msra.mxu0 %v503_v1  ;;  %455 = vmatpush3.bf16.msra.mxu1 %v504_v4  ;;  %v509_v9 = vld [vmem:[#allocation7 + $0x10] sm:$0xff]   ;;  %v510_v10 = vld [vmem:[#allocation7 + $0x8] sm:$0xff]   ;;  %v511_v11 = vld [vmem:[#allocation7] sm:$0xff]  }
  0x37   :  { %474 = vmatprep.subr.bf16.mxu0 %v642_v0  ;;  %456 = vmatprep.subr.bf16.mxu1 %v642_v0  ;;  %v512_v12 = vld [vmem:[#allocation8 + $0x38] sm:$0xff]   ;;  %v513_v13 = vld [vmem:[#allocation8 + $0x30] sm:$0xff]   ;;  %v514_v14 = vld [vmem:[#allocation8 + $0x28] sm:$0xff]   ;;  %vm365_vm2 = vcmp.lt.s32.totalorder %v364_v37, 13 }
  0x38   :  { %v515_v15 = vld [vmem:[#allocation8 + $0x20] sm:$0xff]   ;;  %v516_v16 = vld [vmem:[#allocation8 + $0x18] sm:$0xff]   ;;  %v517_v17 = vld [vmem:[#allocation8 + $0x10] sm:$0xff]  }
  0x39   :  { %451 = vmatmul.mubr.msk.bf16.vlgmr.msra.gmra.mxu0 %vm93_vm1, %v79_v3  ;;  %v404_v18 = vld [vmem:[%s738_s3] ss:$0 sm:$0xff]  ;;  %v518_v26 = vld [vmem:[#allocation8 + $0x8] sm:$0xff]   ;;  %v519_v27 = vld [vmem:[#allocation8] sm:$0xff]  }
  0x3a   :  { %490 = vmatprep.mubr.msk.bf16.mxu0 %vm643_vm0, %v642_v0  ;;  %457 = vmatpush3.bf16.msra.mxu1 %v505_v5  ;;  %v408_v28 = vld [vmem:[%s738_s3 + $0x1] ss:$0 sm:$0xff]  ;;  %v418_v38 = vld [vmem:[%s740_s5] ss:$0 sm:$0xff]  ;;  %s644_s3 = smov [#allocation10]  }
  0x3b   :  { %458 = vmatprep.subr.bf16.mxu1 %v642_v0  ;;  %475 = vmatpush3.bf16.msra.mxu0 %v512_v12  ;;  %s393_s5 = sshll.u32 %s644_s3, 4  ;;  %s394_s5 = int_to_ptr.vmem [resolvable:$true] %s393_s5 }
  0x3c   :  { %476 = vmatprep.subr.bf16.mxu0 %v642_v0  ;;  %s608_s21 = scalar_lea.vmem %s394_s5, 32  ;;  %p613_p7 = scmp.lt.s32.totalorder %s394_s5, %s394_s5 }
  0x3d   :  { %p609_p6 = scmp.ne.s32.totalorder %s394_s5, %s608_s21  ;;  %p614_p8 = scmp.lt.s32.totalorder %s608_s21, %s608_s21 }
  0x3e   :  { %459 = vmatpush3.bf16.msra.mxu1 %v506_v6 }
  0x3f   :  { %460 = vmatprep.subr.bf16.mxu1 %v642_v0  ;;  %477 = vmatpush3.bf16.msra.mxu0 %v513_v13  ;;  %p615_p9 = por %p614_p8, %p613_p7 }
  0x40   :  { %478 = vmatprep.subr.bf16.mxu0 %v642_v0 }
  0x41   :  { %p616_p10 = pnand %p615_p9, %p609_p6 }
  0x42   :  { %461 = vmatpush3.bf16.msra.mxu1 %v507_v7 }
  0x43   :  { %462 = vmatprep.subr.bf16.mxu1 %v642_v0  ;;  %479 = vmatpush3.bf16.msra.mxu0 %v514_v14 }
  0x44   :  { %480 = vmatprep.subr.bf16.mxu0 %v642_v0 }
  0x46   :  { %463 = vmatpush3.bf16.msra.mxu1 %v508_v8 }
  0x47   :  { %464 = vmatprep.subr.bf16.mxu1 %v642_v0  ;;  %481 = vmatpush3.bf16.msra.mxu0 %v515_v15 }
  0x48   :  { %482 = vmatprep.subr.bf16.mxu0 %v642_v0 }
  0x4a   :  { %465 = vmatpush3.bf16.msra.mxu1 %v509_v9 }
  0x4b   :  { %466 = vmatprep.subr.bf16.mxu1 %v642_v0  ;;  %483 = vmatpush3.bf16.msra.mxu0 %v516_v16 }
  0x4c   :  { %484 = vmatprep.subr.bf16.mxu0 %v642_v0 }
  0x4e   :  { %467 = vmatpush3.bf16.msra.mxu1 %v510_v10 }
  0x4f   :  { %468 = vmatprep.subr.bf16.mxu1 %v642_v0  ;;  %485 = vmatpush3.bf16.msra.mxu0 %v517_v17 }
  0x50   :  { %486 = vmatprep.subr.bf16.mxu0 %v642_v0 }
  0x52   :  { %469 = vmatpush3.bf16.msra.mxu1 %v511_v11 }
  0x53   :  { %487 = vmatpush3.bf16.msra.mxu0 %v518_v26 }
  0x54   :  { %488 = vmatprep.subr.bf16.mxu0 %v642_v0 }
  0x57   :  { %489 = vmatpush3.bf16.msra.mxu0 %v519_v27 }
  0xf9   :  { %v131_v19 = vpop.f32.mrf.mxu0 }
  0xfa   :  { %v132_v20 = vadd.f32 %v404_v18, %v131_v19 }
  0xfb   :  { %v452_v21 = vpop.f32.mrf.mxu0 }
  0xfc   :  { %v407_v22 = vclamps-f32 %v132_v20, 1.0 }
  0xfd   :  { %v134_v23 = vpop.f32.mrf.mxu0 }
  0xfe   :  { %v139_v24 = vpack.c.bf16 %v407_v22, %v407_v22 }
  0xff   :  { %v453_v25 = vpop.f32.mrf.mxu0 }
 0x100   :  { %471 = vmatmul.mubr.bf16.vlgmr.msra.gmra.mxu1 %v139_v24 }
 0x1c0   :  { %v243_v29 = vpop.f32.mrf.mxu1 }
 0x1c1   :  { %v244_v30 = vadd.f32 %v408_v28, %v243_v29 }
 0x1c2   :  { %v472_v31 = vpop.f32.mrf.mxu1 }
 0x1c3   :  { %v417_v32 = vclamps-f32 %v244_v30, 1.0 }
 0x1c4   :  { %v246_v33 = vpop.f32.mrf.mxu1 }
 0x1c5   :  { %v251_v34 = vpack.c.bf16 %v417_v32, %v417_v32 }
 0x1c6   :  { %v473_v35 = vpop.f32.mrf.mxu1 }
 0x1c7   :  { %491 = vmatmul.mubr.bf16.vlgmr.msra.gmra.mxu0 %v251_v34 }
 0x287   :  { %v357_v39 = vpop.f32.mrf.mxu0 }
 0x288   :  { %v358_v40 = vadd.f32 %v418_v38, %v357_v39 }
 0x289   :  { %v492_v41 = vpop.f32.mrf.mxu0 }
 0x28a   :  { %v366_v42 = vsel %vm365_vm2, %v358_v40, -inf  ;;  %v427_v51 = vmul.f32 -1.442695, %v358_v40 }
 0x28b   :  { %v360_v43 = vpop.f32.mrf.mxu0  ;;  %v368_v44 = vsel %vm367_vm3, %v366_v42, -inf }
 0x28c   :  { %369 = vmax.xlane.f32.xlu0 %v368_v44 }
 0x28d   :  { %v493_v45 = vpop.f32.mrf.mxu0 }
 0x315   :  { %v370_v46 = vpop.xlane.xlu0 %369 }
 0x316   :  { %v371_v47 = vsub.f32 %v366_v42, %v370_v46 }
 0x318   :  { %v372_v48 = vmul.f32 1.442695, %v371_v47 }
 0x31a   :  { %520 = vpow2.f32 %v372_v48 }
 0x31b   :  { %522 = vpow2.f32 %v427_v51 }
 0x327   :  { %v521_v49 = vpop.eup %520 }
 0x328   :  { %v374_v50 = vsel %vm367_vm3, %v521_v49, 0.0  ;;  %v523_v52 = vpop.eup %522 }
 0x329   :  { %375 = vadd.xlane.f32.xlu0 %v374_v50  ;;  %v382_v53 = vadd.f32 1.0, %v523_v52 }
 0x3b2   :  { %v376_v54 = vpop.xlane.xlu0 %375 }
 0x3b3   :  { %524 = vrcp.f32 %v376_v54 }
 0x3b4   :  { %526 = vrcp.f32 %v382_v53 }
 0x3c0   :  { %v525_v55 = vpop.eup %524 }
 0x3c1   :  { %v378_v56 = vmul.f32 %v525_v55, %v521_v49  ;;  %v527_v57 = vpop.eup %526 }
 0x3c3   :  { %v385_v58 = vsel %vm365_vm2, %v378_v56, %v527_v57 }
 0x3c4   :  { %386 = vst [vmem:[#allocation10] sm:$0x3] %v385_v58 }
 0x3c5   :  { %619 = shalt.err (!%p616_p10)
}
 0x3c6   :  { %396 = dma.vmem_to_hbm [thread:$0]  %s394_s5, 32, %s741_s6, [#allocation4]  }
 0x3c7   :  { %634 = dma.done.wait [#allocation4], 32  }
 0x3c8   :  { %635 = vsyncadd [#allocation4], 4294967264 }
 0x3c9   :  { %400 = vsyncpa [#allocation3], 1 }
 0x3ca   :  { %401 = vsyncpa [#allocation6], 1 }
 0x3cb   :  { %402 = vsyncpa [#allocation9], 1 }
 0x3cc   :  { %403 = vsyncpa [#allocation4], 1 }

</bundles_post_ra>
